<compile_context>
chip_gen: v7x
topology: tpu7x:2x2x1
jax: 0.10.0
libtpu: 0.0.40
codegen_flags: <defaults>
</compile_context>

<pallas_src>
import functools

import jax
import jax.numpy as jnp
from jax.experimental import pallas as pl
from jax.experimental.pallas import tpu as pltpu


def _round_up(n: int, m: int) -> int:
    return ((n + m - 1) // m) * m


def _multi2add_kernel(x_ref, wc_ref, bc_ref, wf_ref, bf_ref, out_ref):
    """Fused 1x1-conv (all ensembles stacked) + bias + ReLU + global-avg-pool
    + all classifiers + ensemble-sum.  Single grid-less invocation, all in VMEM.

      x:   (B*P, C)    channels-last pixels
      wc:  (C,   EFp)  stacked, lane-padded 1x1-conv weights (all ensembles)
      bc:  (1,   EFp)  stacked conv biases
      wf:  (EFp, Kp)   stacked fc weights, pre-scaled by 1/(P*beforeT*afterT)
      bf:  (1,   Kp)   fc biases summed over ensembles, pre-scaled by 1/afterT
      out: (B,   Kp)   lane-dense padded logits
    """
    B = out_ref.shape[0]
    P = x_ref.shape[0] // B

    # Backbone 1x1 conv over every pixel of every batch in one MXU matmul.
    feat = jnp.dot(x_ref[...], wc_ref[...],
                   preferred_element_type=jnp.float32) + bc_ref[...]
    feat = jnp.maximum(feat, 0.0)                                   # (B*P, EFp)

    # Global average pool: free leading-dim split + sublane-axis sum (VPU/XLU).
    # No pool_mat operand, no extra MXU pass; the 1/P scale is folded into wf.
    pooled = jnp.sum(feat.reshape(B, P, feat.shape[-1]), axis=1)    # (B, EFp)

    # All classifiers + ensemble sum in one matmul (temperatures pre-folded).
    # NOTE: B=2 rows -> one masked-sublane store; padding B->8 is optional here.
    out_ref[...] = (jnp.dot(pooled, wf_ref[...],
                            preferred_element_type=jnp.float32)
                    + bf_ref[...]).astype(out_ref.dtype)            # (B, Kp)


def prepare_multi2add_params(conv_w, conv_b, fc_w, fc_b, *, spatial,
                             before_t=1.0, after_t=1.0):
    """One-time weight prep (hoisted out of the per-call hot path).

    conv_w: [E, C, F], conv_b: [E, 1, F], fc_w: [E, F, K], fc_b: [E, 1, K].
    Stacks all ensembles along the feature axis (e-major), folds the 1/P pool
    scale and the 1/beforeT, 1/afterT temperatures into the fc weights/biases,
    and zero-pads the stacked-feature / class axes to multiples of 128 lanes.
    """
    E, C, F = conv_w.shape
    K = fc_w.shape[-1]
    EF = E * F
    EFp = _round_up(EF, 128)
    Kp = _round_up(K, 128)

    wc = jnp.transpose(conv_w, (1, 0, 2)).reshape(C, EF)            # (C, E*F)
    bc = conv_b.reshape(1, EF)                                      # (1, E*F)
    scale = 1.0 / (float(spatial) * float(before_t) * float(after_t))
    wf = fc_w.reshape(EF, K) * scale                                # (E*F, K)
    bf = jnp.sum(fc_b, axis=0) * (1.0 / float(after_t))             # (1, K)

    wc = jnp.pad(wc, ((0, 0), (0, EFp - EF)))
    bc = jnp.pad(bc, ((0, 0), (0, EFp - EF)))
    wf = jnp.pad(wf, ((0, EFp - EF), (0, Kp - K)))
    bf = jnp.pad(bf, ((0, 0), (0, Kp - K)))
    return wc, bc, wf, bf


@functools.partial(jax.jit, static_argnames=("num_classes",))
def multi2add_fwd(x_nhwc, wc, bc, wf, bf, *, num_classes):
    """Hot path: channels-last activations in, [B, num_classes] logits out."""
    B, H, W, C = x_nhwc.shape
    Kp = wf.shape[-1]
    x2d = x_nhwc.reshape(B * H * W, C)   # free reshape; no transpose in hot path

    out_padded = pl.pallas_call(
        _multi2add_kernel,
        out_shape=jax.ShapeDtypeStruct((B, Kp), jnp.float32),
        in_specs=[pl.BlockSpec(memory_space=pltpu.MemorySpace.VMEM)] * 5,
        out_specs=pl.BlockSpec(memory_space=pltpu.MemorySpace.VMEM),
    )(x2d, wc, bc, wf, bf)
    return out_padded[:, :num_classes]


def _reference(x_nchw, conv_w, conv_b, fc_w, fc_b, before_t, after_t):
    B, C, H, W = x_nchw.shape
    x = jnp.transpose(x_nchw, (0, 2, 3, 1)).reshape(B, H * W, C)
    out = 0.0
    for e in range(conv_w.shape[0]):
        feat = jnp.maximum(
            jnp.einsum('bpc,cf->bpf', x, conv_w[e]) + conv_b[e][None], 0.0)
        pooled = jnp.mean(feat, axis=1) / before_t
        logits = (pooled @ fc_w[e] + fc_b[e]) / after_t
        out = out + logits
    return out


if __name__ == "__main__":
    key = jax.random.PRNGKey(0)

    B, C, H, W = 2, 4, 16, 16     # input (the PyTorch module consumes NCHW)
    E = 3                         # number of (backbone, classifier) pairs
    F = 32                        # backbone feature width
    K = 16                        # num classes
    before_t, after_t = 2.0, 3.0

    k_x, k_cw, k_cb, k_fw, k_fb = jax.random.split(key, 5)
    x_nchw = jax.random.normal(k_x, (B, C, H, W), dtype=jnp.float32)
    conv_w = jax.random.normal(k_cw, (E, C, F), dtype=jnp.float32) * 0.1
    conv_b = jax.random.normal(k_cb, (E, 1, F), dtype=jnp.float32) * 0.1
    fc_w = jax.random.normal(k_fw, (E, F, K), dtype=jnp.float32) * 0.1
    fc_b = jax.random.normal(k_fb, (E, 1, K), dtype=jnp.float32) * 0.1

    # One-time prep: stack/pad/scale ensemble weights (outside the hot path).
    wc, bc, wf, bf = prepare_multi2add_params(
        conv_w, conv_b, fc_w, fc_b, spatial=H * W,
        before_t=before_t, after_t=after_t)
    wc, bc, wf, bf = jax.block_until_ready((wc, bc, wf, bf))

    # The hot path consumes channels-last activations; the single NCHW->NHWC
    # layout conversion happens here, once, outside the kernel call path.
    x_nhwc = jnp.transpose(x_nchw, (0, 2, 3, 1))

    out = multi2add_fwd(x_nhwc, wc, bc, wf, bf, num_classes=K)
    out = jax.block_until_ready(out)

    ref = _reference(x_nchw, conv_w, conv_b, fc_w, fc_b, before_t, after_t)
    assert out.shape == (B, K)
    # Both sides use default TPU matmul precision; remaining diffs come only from
    # op re-association (scale folding, sum-vs-mean pooling), hence the tolerance.
    assert jnp.allclose(out, ref, atol=5e-4, rtol=1e-3), "mismatch vs reference"

    print("KERNEL_OK")
</pallas_src>

<mosaic_0001>
module attributes {stable_mosaic.version = 11 : i64} {
  func.func @_multi2add_kernel(%arg0: memref<512x4xf32, #tpu.memory_space<vmem>>, %arg1: memref<4x128xf32, #tpu.memory_space<vmem>>, %arg2: memref<1x128xf32, #tpu.memory_space<vmem>>, %arg3: memref<128x128xf32, #tpu.memory_space<vmem>>, %arg4: memref<1x128xf32, #tpu.memory_space<vmem>>, %arg5: memref<2x128xf32, #tpu.memory_space<vmem>>) attributes {dimension_semantics = [], scalar_prefetch = 0 : i64, scratch_operands = 0 : i64, tpu.core_type = #tpu.core_type<tc>} {
    %c0 = arith.constant 0 : index
    %c0_0 = arith.constant 0 : index
    %0 = vector.load %arg0[%c0, %c0_0] : memref<512x4xf32, #tpu.memory_space<vmem>>, vector<512x4xf32>
    %c0_1 = arith.constant 0 : index
    %c0_2 = arith.constant 0 : index
    %1 = vector.load %arg1[%c0_1, %c0_2] : memref<4x128xf32, #tpu.memory_space<vmem>>, vector<4x128xf32>
    %cst = arith.constant dense<0.000000e+00> : vector<512x128xf32>
    %2 = tpu.matmul %0, %1, %cst {dimension_numbers = #tpu.dot_dimension_numbers<[1], [0], [0], [1], [0, 0, 1, 1], [], []>} : vector<512x4xf32>, vector<4x128xf32>, vector<512x128xf32> -> vector<512x128xf32>
    %c0_3 = arith.constant 0 : index
    %c0_4 = arith.constant 0 : index
    %3 = vector.load %arg2[%c0_3, %c0_4] : memref<1x128xf32, #tpu.memory_space<vmem>>, vector<1x128xf32>
    %4 = vector.broadcast %3 : vector<1x128xf32> to vector<512x128xf32>
    %5 = arith.addf %2, %4 : vector<512x128xf32>
    %cst_5 = arith.constant 0.000000e+00 : f32
    %6 = vector.broadcast %cst_5 : f32 to vector<512x128xf32>
    %7 = arith.maximumf %5, %6 : vector<512x128xf32>
    %8 = vector.shape_cast %7 : vector<512x128xf32> to vector<2x256x128xf32>
    %cst_6 = arith.constant dense<0.000000e+00> : vector<2x128xf32>
    %9 = vector.multi_reduction <add>, %8, %cst_6 [1] : vector<2x256x128xf32> to vector<2x128xf32>
    %c0_7 = arith.constant 0 : index
    %c0_8 = arith.constant 0 : index
    %10 = vector.load %arg3[%c0_7, %c0_8] : memref<128x128xf32, #tpu.memory_space<vmem>>, vector<128x128xf32>
    %cst_9 = arith.constant dense<0.000000e+00> : vector<2x128xf32>
    %11 = tpu.matmul %9, %10, %cst_9 {dimension_numbers = #tpu.dot_dimension_numbers<[1], [0], [0], [1], [0, 0, 1, 1], [], []>} : vector<2x128xf32>, vector<128x128xf32>, vector<2x128xf32> -> vector<2x128xf32>
    %c0_10 = arith.constant 0 : index
    %c0_11 = arith.constant 0 : index
    %12 = vector.load %arg4[%c0_10, %c0_11] : memref<1x128xf32, #tpu.memory_space<vmem>>, vector<1x128xf32>
    %13 = vector.broadcast %12 : vector<1x128xf32> to vector<2x128xf32>
    %14 = arith.addf %11, %13 : vector<2x128xf32>
    %c0_12 = arith.constant 0 : index
    %c0_13 = arith.constant 0 : index
    %15 = vector.load %arg5[%c0_12, %c0_13] : memref<2x128xf32, #tpu.memory_space<vmem>>, vector<2x128xf32>
    tpu.vector_store %arg5[%c0_12, %c0_13], %14 {strides = array<i32>} : memref<2x128xf32, #tpu.memory_space<vmem>>, vector<2x128xf32>,
    return
  }
}

</mosaic_0001>

<bundles_post_ra>
// kernel: multi2add_fwd.1
= control target key start
LH: loop header
LB: loop body
LE: loop exit
PB: predicated region body
PF: predicated region fallthrough
CT: control target
= control target key end

     0   :  { %vm286_vm0 = vcmask 1043456   ;;  %vm93_vm1 = vcmask 31744   ;;  %s1781_s0 = inlined_call_operand.vmem [shape: f32[512,4], index: 0, kind: input, shape index: {}]   ;;  %s1782_s1 = inlined_call_operand.vmem [shape: f32[4,128], index: 1, kind: input, shape index: {}]   ;;  %s1783_s2 = inlined_call_operand.vmem [shape: f32[1,128], index: 2, kind: input, shape index: {}]   ;;  %s1784_s3 = inlined_call_operand.vmem [shape: f32[128,128], index: 3, kind: input, shape index: {}]   ;;  %s1785_s4 = inlined_call_operand.vmem [shape: f32[1,128], index: 4, kind: input, shape index: {}]   ;;  %s1786_s5 = inlined_call_operand.hbm [shape: f32[2,128], index: 5, kind: output, shape index: {}]  }
   0x1   :  { %v85_v0 = vld [vmem:[%s1782_s1] sm:$0xf]  ;;  %v22_v2 = vld [vmem:[%s1781_s0 + $0x8] sm:$0xff]  ;;  %v23_v3 = vld [vmem:[%s1781_s0 + $0x10] sm:$0xff] }
   0x2   :  { %v21_v1 = vld [vmem:[%s1781_s0] sm:$0xff]  ;;  %1075 = vmatprep.subr.msk.mxu0 %vm286_vm0, %v85_v0  ;;  %1232 = vmatprep.subr.msk.mxu1 %vm286_vm0, %v85_v0  ;;  %v24_v4 = vld [vmem:[%s1781_s0 + $0x18] sm:$0xff]  ;;  %v26_v6 = vld [vmem:[%s1781_s0 + $0x28] sm:$0xff] }
   0x3   :  { %1077 = vmatprep.mubr.msk.f32.mxu0 %vm93_vm1, %v21_v1  ;;  %1076 = vmatpush3.msk.msra.mxu0 %vm286_vm0, %v85_v0  ;;  %v25_v5 = vld [vmem:[%s1781_s0 + $0x20] sm:$0xff]  ;;  %v27_v7 = vld [vmem:[%s1781_s0 + $0x30] sm:$0xff]  ;;  %v28_v9 = vld [vmem:[%s1781_s0 + $0x38] sm:$0xff] }
   0x4   :  { %1078 = vmatmul.mubr.msk.f32.vlgmr.msra.gmra.mrb[0].mxu0 %vm93_vm1, %v22_v2  ;;  %1233 = vmatpush3.msk.msra.mxu1 %vm286_vm0, %v85_v0  ;;  %v55_v8 = vld [vmem:[%s1781_s0 + $0x110] sm:$0xff]  ;;  %v56_v10 = vld [vmem:[%s1781_s0 + $0x118] sm:$0xff]  ;;  %v57_v11 = vld [vmem:[%s1781_s0 + $0x120] sm:$0xff] }
   0x5   :  { %1080 = vmatprep.mubr.msk.f32.mxu0 %vm93_vm1, %v23_v3  ;;  %1128 = vmatprep.mubr.msk.f32.mxu1 %vm93_vm1, %v55_v8  ;;  %v29_v12 = vld [vmem:[%s1781_s0 + $0x40] sm:$0xff]  ;;  %v58_v13 = vld [vmem:[%s1781_s0 + $0x128] sm:$0xff]  ;;  %v59_v14 = vld [vmem:[%s1781_s0 + $0x130] sm:$0xff] }
   0x6   :  { %1129 = vmatmul.mubr.msk.f32.vlgmr.msra.gmra.mrb[0].mxu1 %vm93_vm1, %v56_v10  ;;  %v30_v15 = vld [vmem:[%s1781_s0 + $0x48] sm:$0xff]  ;;  %v31_v16 = vld [vmem:[%s1781_s0 + $0x50] sm:$0xff]  ;;  %v60_v17 = vld [vmem:[%s1781_s0 + $0x138] sm:$0xff] }
   0x7   :  { %1131 = vmatprep.mubr.msk.f32.mxu1 %vm93_vm1, %v57_v11  ;;  %v61_v18 = vld [vmem:[%s1781_s0 + $0x140] sm:$0xff]  ;;  %v32_v19 = vld [vmem:[%s1781_s0 + $0x58] sm:$0xff] }
   0x8   :  { %1081 = vmatmul.mubr.msk.f32.gmra.mrb[2].mxu0 %vm93_vm1, %v24_v4  ;;  %v33_v20 = vld [vmem:[%s1781_s0 + $0x60] sm:$0xff] }
   0x9   :  { %1083 = vmatprep.mubr.msk.f32.mxu0 %vm93_vm1, %v25_v5 }
   0xa   :  { %1132 = vmatmul.mubr.msk.f32.gmra.mrb[2].mxu1 %vm93_vm1, %v58_v13 }
   0xb   :  { %1134 = vmatprep.mubr.msk.f32.mxu1 %vm93_vm1, %v59_v14 }
   0xc   :  { %1084 = vmatmul.mubr.msk.f32.gmra.mrb[4].mxu0 %vm93_vm1, %v26_v6 }
   0xd   :  { %1086 = vmatprep.mubr.msk.f32.mxu0 %vm93_vm1, %v27_v7 }
   0xe   :  { %1135 = vmatmul.mubr.msk.f32.gmra.mrb[4].mxu1 %vm93_vm1, %v60_v17 }
  0x10   :  { %1087 = vmatmul.mubr.msk.f32.gmra.mrb[6].mxu0 %vm93_vm1, %v28_v9 }
  0x11   :  { %1089 = vmatprep.mubr.msk.f32.mxu0 %vm93_vm1, %v29_v12 }
  0x14   :  { %1090 = vmatmul.mubr.msk.f32.gmra.mrb[8].mxu0 %vm93_vm1, %v30_v15 }
  0x15   :  { %1092 = vmatprep.mubr.msk.f32.mxu0 %vm93_vm1, %v31_v16 }
  0x16   :  { %10 = vsyncpa [#allocation3], 0  ;;  %1137 = vmatprep.mubr.msk.f32.mxu1 %vm93_vm1, %v61_v18  ;;  %v62_v21 = vld [vmem:[%s1781_s0 + $0x148] sm:$0xff]  ;;  %v63_v22 = vld [vmem:[%s1781_s0 + $0x150] sm:$0xff]  ;;  %v1262_v3 = vmov 0.0|0.0   ;;  %vm1263_vm2 = vmmov 0  }
  0x17   :  { %v34_v23 = vld [vmem:[%s1781_s0 + $0x68] sm:$0xff]  ;;  %v35_v24 = vld [vmem:[%s1781_s0 + $0x70] sm:$0xff]  ;;  %1138 = vmatmul.mubr.msk.f32.gmra.mrb[6].mxu1 %vm93_vm1, %v62_v21  ;;  %v64_v25 = vld [vmem:[%s1781_s0 + $0x158] sm:$0xff]  ;;  %1208 = vmatprep.subr.bf16.mxu1 %v1262_v3  ;;  %vm838_vm3 = vcmask 1041409   ;;  %s1265_s24 = smov [#allocation2]  }
  0x18   :  { %1093 = vmatmul.mubr.msk.f32.gmra.mrb[10].mxu0 %vm93_vm1, %v32_v19  ;;  %1140 = vmatprep.mubr.msk.f32.mxu1 %vm93_vm1, %v63_v22  ;;  %v65_v26 = vld [vmem:[%s1781_s0 + $0x160] sm:$0xff]  ;;  %v36_v27 = vld [vmem:[%s1781_s0 + $0x78] sm:$0xff]  ;;  %v66_v29 = vld [vmem:[%s1781_s0 + $0x168] sm:$0xff]  ;;  %s918_s25 = sshll.u32 %s1265_s24, 4  ;;  %s919_s25 = int_to_ptr.vmem [resolvable:$true] %s918_s25 }
  0x19   :  { %1095 = vmatprep.mubr.msk.f32.mxu0 %vm93_vm1, %v33_v20  ;;  %v37_v28 = vld [vmem:[%s1781_s0 + $0x80] sm:$0xff]  ;;  %v67_v30 = vld [vmem:[%s1781_s0 + $0x170] sm:$0xff]  ;;  %v38_v31 = vld [vmem:[%s1781_s0 + $0x88] sm:$0xff]  ;;  %s1238_s1 = scalar_lea.vmem %s919_s25, 32  ;;  %p1243_p1 = scmp.lt.s32.totalorder %s919_s25, %s919_s25 }
  0x1a   :  { %v39_v32 = vld [vmem:[%s1781_s0 + $0x90] sm:$0xff]  ;;  %v68_v33 = vld [vmem:[%s1781_s0 + $0x178] sm:$0xff]  ;;  %v69_v34 = vld [vmem:[%s1781_s0 + $0x180] sm:$0xff]  ;;  %p1239_p0 = scmp.ne.s32.totalorder %s919_s25, %s1238_s1  ;;  %p1244_p2 = scmp.lt.s32.totalorder %s1238_s1, %s1238_s1 }
  0x1b   :  { %1141 = vmatmul.mubr.msk.f32.gmra.mrb[8].mxu1 %vm93_vm1, %v64_v25  ;;  %v40_v35 = vld [vmem:[%s1781_s0 + $0x98] sm:$0xff]  ;;  %v41_v36 = vld [vmem:[%s1781_s0 + $0xa0] sm:$0xff]  ;;  %v70_v37 = vld [vmem:[%s1781_s0 + $0x188] sm:$0xff] }
  0x1c   :  { %1096 = vmatmul.mubr.msk.f32.gmra.mrb[12].mxu0 %vm93_vm1, %v34_v23  ;;  %1143 = vmatprep.mubr.msk.f32.mxu1 %vm93_vm1, %v65_v26  ;;  %v71_v38 = vld [vmem:[%s1781_s0 + $0x190] sm:$0xff]  ;;  %v42_v39 = vld [vmem:[%s1781_s0 + $0xa8] sm:$0xff]  ;;  %v72_v41 = vld [vmem:[%s1781_s0 + $0x198] sm:$0xff]  ;;  %p1245_p3 = por %p1244_p2, %p1243_p1 }
  0x1d   :  { %1098 = vmatprep.mubr.msk.f32.mxu0 %vm93_vm1, %v35_v24  ;;  %v43_v40 = vld [vmem:[%s1781_s0 + $0xb0] sm:$0xff]  ;;  %v73_v42 = vld [vmem:[%s1781_s0 + $0x1a0] sm:$0xff]  ;;  %v44_v43 = vld [vmem:[%s1781_s0 + $0xb8] sm:$0xff] }
  0x1e   :  { %v45_v44 = vld [vmem:[%s1781_s0 + $0xc0] sm:$0xff]  ;;  %v74_v45 = vld [vmem:[%s1781_s0 + $0x1a8] sm:$0xff]  ;;  %v75_v46 = vld [vmem:[%s1781_s0 + $0x1b0] sm:$0xff]  ;;  %p1246_p4 = pnand %p1245_p3, %p1239_p0 }
  0x1f   :  { %1144 = vmatmul.mubr.msk.f32.gmra.mrb[10].mxu1 %vm93_vm1, %v66_v29  ;;  %v46_v47 = vld [vmem:[%s1781_s0 + $0xc8] sm:$0xff]  ;;  %v47_v48 = vld [vmem:[%s1781_s0 + $0xd0] sm:$0xff]  ;;  %v76_v49 = vld [vmem:[%s1781_s0 + $0x1b8] sm:$0xff] }
  0x20   :  { %1099 = vmatmul.mubr.msk.f32.gmra.mrb[14].mxu0 %vm93_vm1, %v36_v27  ;;  %1146 = vmatprep.mubr.msk.f32.mxu1 %vm93_vm1, %v67_v30  ;;  %v77_v50 = vld [vmem:[%s1781_s0 + $0x1c0] sm:$0xff]  ;;  %v48_v51 = vld [vmem:[%s1781_s0 + $0xd8] sm:$0xff]  ;;  %v78_v53 = vld [vmem:[%s1781_s0 + $0x1c8] sm:$0xff] }
  0x21   :  { %1101 = vmatprep.mubr.msk.f32.mxu0 %vm93_vm1, %v37_v28  ;;  %v49_v52 = vld [vmem:[%s1781_s0 + $0xe0] sm:$0xff]  ;;  %v79_v54 = vld [vmem:[%s1781_s0 + $0x1d0] sm:$0xff]  ;;  %v50_v55 = vld [vmem:[%s1781_s0 + $0xe8] sm:$0xff] }
  0x22   :  { %v51_v56 = vld [vmem:[%s1781_s0 + $0xf0] sm:$0xff]  ;;  %v80_v57 = vld [vmem:[%s1781_s0 + $0x1d8] sm:$0xff]  ;;  %v81_v58 = vld [vmem:[%s1781_s0 + $0x1e0] sm:$0xff] }
  0x23   :  { %1147 = vmatmul.mubr.msk.f32.gmra.mrb[12].mxu1 %vm93_vm1, %v68_v33  ;;  %v52_v59 = vld [vmem:[%s1781_s0 + $0xf8] sm:$0xff]  ;;  %v53_v60 = vld [vmem:[%s1781_s0 + $0x100] sm:$0xff]  ;;  %v82_v61 = vld [vmem:[%s1781_s0 + $0x1e8] sm:$0xff] }
  0x24   :  { %1102 = vmatmul.mubr.msk.f32.gmra.mrb[16].mxu0 %vm93_vm1, %v38_v31  ;;  %1149 = vmatprep.mubr.msk.f32.mxu1 %vm93_vm1, %v69_v34  ;;  %v83_v62 = vld [vmem:[%s1781_s0 + $0x1f0] sm:$0xff]  ;;  %v54_v63 = vld [vmem:[%s1781_s0 + $0x108] sm:$0xff]  ;;  %v84_v0 = vld [vmem:[%s1781_s0 + $0x1f8] sm:$0xff] }
  0x25   :  { %1104 = vmatprep.mubr.msk.f32.mxu0 %vm93_vm1, %v39_v32  ;;  %v813_v1 = vld [vmem:[%s1784_s3] sm:$0xff]  ;;  %v814_v2 = vld [vmem:[%s1784_s3 + $0x8] sm:$0xff]  ;;  %v815_v5 = vld [vmem:[%s1784_s3 + $0x10] sm:$0xff] }
  0x26   :  { %v1209_v4 = vpack.c.bf16 %v814_v2, %v813_v1  ;;  %v816_v6 = vld [vmem:[%s1784_s3 + $0x18] sm:$0xff]  ;;  %v817_v8 = vld [vmem:[%s1784_s3 + $0x20] sm:$0xff]  ;;  %v818_v9 = vld [vmem:[%s1784_s3 + $0x28] sm:$0xff] }
  0x27   :  { %1150 = vmatmul.mubr.msk.f32.gmra.mrb[14].mxu1 %vm93_vm1, %v70_v37  ;;  %v1212_v7 = vpack.c.bf16 %v816_v6, %v815_v5  ;;  %v1215_v10 = vpack.c.bf16 %v818_v9, %v817_v8  ;;  %v819_v11 = vld [vmem:[%s1784_s3 + $0x30] sm:$0xff]  ;;  %v820_v12 = vld [vmem:[%s1784_s3 + $0x38] sm:$0xff]  ;;  %v821_v14 = vld [vmem:[%s1784_s3 + $0x40] sm:$0xff] }
  0x28   :  { %1105 = vmatmul.mubr.msk.f32.gmra.mrb[18].mxu0 %vm93_vm1, %v40_v35  ;;  %1152 = vmatprep.mubr.msk.f32.mxu1 %vm93_vm1, %v71_v38  ;;  %v1218_v13 = vpack.c.bf16 %v820_v12, %v819_v11  ;;  %v822_v15 = vld [vmem:[%s1784_s3 + $0x48] sm:$0xff]  ;;  %v1588_v17 = vld [vmem:[%s1783_s2] ss:$0 sm:$0xff]  ;;  %v823_v23 = vld [vmem:[%s1784_s3 + $0x50] sm:$0xff] }
  0x29   :  { %1107 = vmatprep.mubr.msk.f32.mxu0 %vm93_vm1, %v41_v36  ;;  %1210 = vmatpush3.bf16.msra.mxu1 %v1209_v4  ;;  %v1221_v16 = vpack.c.bf16 %v822_v15, %v821_v14  ;;  %v824_v24 = vld [vmem:[%s1784_s3 + $0x58] sm:$0xff]  ;;  %v825_v32 = vld [vmem:[%s1784_s3 + $0x60] sm:$0xff]  ;;  %v826_v33 = vld [vmem:[%s1784_s3 + $0x68] sm:$0xff] }
  0x2a   :  { %1211 = vmatprep.subr.bf16.mxu1 %v1262_v3  ;;  %v1224_v27 = vpack.c.bf16 %v824_v24, %v823_v23  ;;  %v1227_v36 = vpack.c.bf16 %v826_v33, %v825_v32 }
  0x2b   :  { %1153 = vmatmul.mubr.msk.f32.gmra.mrb[16].mxu1 %vm93_vm1, %v72_v41 }
  0x2c   :  { %1108 = vmatmul.mubr.msk.f32.gmra.mrb[20].mxu0 %vm93_vm1, %v42_v39  ;;  %1155 = vmatprep.mubr.msk.f32.mxu1 %vm93_vm1, %v73_v42 }
  0x2d   :  { %1110 = vmatprep.mubr.msk.f32.mxu0 %vm93_vm1, %v43_v40  ;;  %1213 = vmatpush3.bf16.msra.mxu1 %v1212_v7 }
  0x2e   :  { %1214 = vmatprep.subr.bf16.mxu1 %v1262_v3 }
  0x2f   :  { %1156 = vmatmul.mubr.msk.f32.gmra.mrb[18].mxu1 %vm93_vm1, %v74_v45  ;;  %v828_v45 = vld [vmem:[%s1784_s3 + $0x78] sm:$0xff] }
  0x30   :  { %1111 = vmatmul.mubr.msk.f32.gmra.mrb[22].mxu0 %vm93_vm1, %v44_v43  ;;  %1158 = vmatprep.mubr.msk.f32.mxu1 %vm93_vm1, %v75_v46 }
  0x31   :  { %1113 = vmatprep.mubr.msk.f32.mxu0 %vm93_vm1, %v45_v44  ;;  %1216 = vmatpush3.bf16.msra.mxu1 %v1215_v10  ;;  %v827_v44 = vld [vmem:[%s1784_s3 + $0x70] sm:$0xff] }
  0x32   :  { %1217 = vmatprep.subr.bf16.mxu1 %v1262_v3 }
  0x33   :  { %1159 = vmatmul.mubr.msk.f32.gmra.mrb[20].mxu1 %vm93_vm1, %v76_v49  ;;  %v1230_v49 = vpack.c.bf16 %v828_v45, %v827_v44 }
  0x34   :  { %1114 = vmatmul.mubr.msk.f32.gmra.mrb[24].mxu0 %vm93_vm1, %v46_v47  ;;  %1161 = vmatprep.mubr.msk.f32.mxu1 %vm93_vm1, %v77_v50 }
  0x35   :  { %1116 = vmatprep.mubr.msk.f32.mxu0 %vm93_vm1, %v47_v48  ;;  %1219 = vmatpush3.bf16.msra.mxu1 %v1218_v13 }
  0x36   :  { %1220 = vmatprep.subr.bf16.mxu1 %v1262_v3 }
  0x37   :  { %1162 = vmatmul.mubr.msk.f32.gmra.mrb[22].mxu1 %vm93_vm1, %v78_v53 }
  0x38   :  { %1117 = vmatmul.mubr.msk.f32.gmra.mrb[26].mxu0 %vm93_vm1, %v48_v51  ;;  %1164 = vmatprep.mubr.msk.f32.mxu1 %vm93_vm1, %v79_v54 }
  0x39   :  { %1119 = vmatprep.mubr.msk.f32.mxu0 %vm93_vm1, %v49_v52  ;;  %1222 = vmatpush3.bf16.msra.mxu1 %v1221_v16 }
  0x3a   :  { %1223 = vmatprep.subr.bf16.mxu1 %v1262_v3 }
  0x3b   :  { %1165 = vmatmul.mubr.msk.f32.gmra.mrb[24].mxu1 %vm93_vm1, %v80_v57 }
  0x3c   :  { %1120 = vmatmul.mubr.msk.f32.gmra.mrb[28].mxu0 %vm93_vm1, %v50_v55  ;;  %1167 = vmatprep.mubr.msk.f32.mxu1 %vm93_vm1, %v81_v58 }
  0x3d   :  { %1122 = vmatprep.mubr.msk.f32.mxu0 %vm93_vm1, %v51_v56  ;;  %1225 = vmatpush3.bf16.msra.mxu1 %v1224_v27  ;;  %v1264_v56 = vmov 0.0  }
  0x3e   :  { %1226 = vmatprep.subr.bf16.mxu1 %v1262_v3 }
  0x3f   :  { %1168 = vmatmul.mubr.msk.f32.gmra.mrb[26].mxu1 %vm93_vm1, %v82_v61 }
  0x40   :  { %1123 = vmatmul.mubr.msk.f32.gmra.mrb[30].mxu0 %vm93_vm1, %v52_v59  ;;  %1170 = vmatprep.mubr.msk.f32.mxu1 %vm93_vm1, %v83_v62 }
  0x41   :  { %1125 = vmatprep.mubr.msk.f32.mxu0 %vm93_vm1, %v53_v60  ;;  %1228 = vmatpush3.bf16.msra.mxu1 %v1227_v36 }
  0x42   :  { %1229 = vmatprep.subr.bf16.mxu1 %v1262_v3 }
  0x43   :  { %1171 = vmatmul.mubr.msk.f32.gmra.mrb[28].mxu1 %vm93_vm1, %v84_v0 }
  0x44   :  { %1126 = vmatmul.mubr.msk.f32.gmra.mrb[32].mxu0 %vm93_vm1, %v54_v63  ;;  %1205 = vmatprep.mubr.msk.f32.mxu1 %vm1263_vm2, %v1264_v56 }
  0x45   :  { %1231 = vmatpush3.bf16.msra.mxu1 %v1230_v49 }
  0xd7   :  { %v1079_v18 = vpop.f32.mrb[0].mxu0 }
  0xd8   :  { %v362_v19 = vadd.f32 %v1079_v18, %v1588_v17  ;;  %v356_v20 = vpop.f32.mrb[1].mxu0 }
  0xd9   :  { %v357_v21 = vadd.f32 %v1588_v17, %v356_v20  ;;  %v1608_v42 = vpop.f32.mrb[0].mxu1 }
  0xda   :  { %v676_v22 = vmax.f32 %v362_v19, 0.0  ;;  %v1610_v43 = vpop.f32.mrb[1].mxu1 }
  0xdb   :  { %v675_v25 = vmax.f32 %v357_v21, 0.0  ;;  %v1082_v26 = vpop.f32.mrb[2].mxu0 }
  0xdc   :  { %v366_v28 = vpop.f32.mrb[3].mxu0  ;;  %v372_v30 = vadd.f32 %v1082_v26, %v1588_v17 }
  0xdd   :  { %v739_v29 = vadd.f32 %v676_v22, %v675_v25  ;;  %v367_v31 = vadd.f32 %v1588_v17, %v366_v28  ;;  %v1620_v55 = vpop.f32.mrb[2].mxu1 }
  0xde   :  { %v678_v38 = vmax.f32 %v372_v30, 0.0  ;;  %v1622_v57 = vpop.f32.mrb[3].mxu1 }
  0xdf   :  { %v677_v34 = vmax.f32 %v367_v31, 0.0  ;;  %v1085_v35 = vpop.f32.mrb[4].mxu0 }
  0xe0   :  { %v376_v37 = vpop.f32.mrb[5].mxu0  ;;  %v382_v40 = vadd.f32 %v1085_v35, %v1588_v17 }
  0xe1   :  { %v740_v39 = vadd.f32 %v739_v29, %v677_v34  ;;  %v377_v41 = vadd.f32 %v1588_v17, %v376_v37  ;;  %v1626_v2 = vpop.f32.mrb[4].mxu1 }
  0xe2   :  { %v680_v51 = vmax.f32 %v382_v40, 0.0  ;;  %v1628_v3 = vpop.f32.mrb[5].mxu1 }
  0xe3   :  { %v679_v46 = vmax.f32 %v377_v41, 0.0  ;;  %v741_v47 = vadd.f32 %v740_v39, %v678_v38  ;;  %v1088_v48 = vpop.f32.mrb[6].mxu0 }
  0xe4   :  { %v386_v50 = vpop.f32.mrb[7].mxu0  ;;  %v392_v53 = vadd.f32 %v1088_v48, %v1588_v17 }
  0xe5   :  { %v742_v52 = vadd.f32 %v741_v47, %v679_v46  ;;  %v387_v54 = vadd.f32 %v1588_v17, %v386_v50 }
  0xe6   :  { %v682_v62 = vmax.f32 %v392_v53, 0.0 }
  0xe7   :  { %v681_v58 = vmax.f32 %v387_v54, 0.0  ;;  %v743_v59 = vadd.f32 %v742_v52, %v680_v51  ;;  %v1091_v60 = vpop.f32.mrb[8].mxu0 }
  0xe8   :  { %v396_v61 = vpop.f32.mrb[9].mxu0  ;;  %v402_v0 = vadd.f32 %v1091_v60, %v1588_v17 }
  0xe9   :  { %v744_v63 = vadd.f32 %v743_v59, %v681_v58  ;;  %v397_v1 = vadd.f32 %v1588_v17, %v396_v61 }
  0xea   :  { %v684_v8 = vmax.f32 %v402_v0, 0.0  ;;  %v1632_v12 = vpop.f32.mrb[6].mxu1 }
  0xeb   :  { %v683_v4 = vmax.f32 %v397_v1, 0.0  ;;  %v745_v5 = vadd.f32 %v744_v63, %v682_v62  ;;  %v1094_v6 = vpop.f32.mrb[10].mxu0  ;;  %v1634_v13 = vpop.f32.mrb[7].mxu1 }
  0xec   :  { %v406_v7 = vpop.f32.mrb[11].mxu0  ;;  %v412_v10 = vadd.f32 %v1094_v6, %v1588_v17 }
  0xed   :  { %v746_v9 = vadd.f32 %v745_v5, %v683_v4  ;;  %v407_v11 = vadd.f32 %v1588_v17, %v406_v7 }
  0xee   :  { %v686_v19 = vmax.f32 %v412_v10, 0.0  ;;  %v1638_v23 = vpop.f32.mrb[8].mxu1 }
  0xef   :  { %v685_v14 = vmax.f32 %v407_v11, 0.0  ;;  %v747_v15 = vadd.f32 %v746_v9, %v684_v8  ;;  %v1097_v16 = vpop.f32.mrb[12].mxu0  ;;  %v1640_v24 = vpop.f32.mrb[9].mxu1 }
  0xf0   :  { %v416_v18 = vpop.f32.mrb[13].mxu0  ;;  %v422_v21 = vadd.f32 %v1097_v16, %v1588_v17 }
  0xf1   :  { %v748_v20 = vadd.f32 %v747_v15, %v685_v14  ;;  %v417_v22 = vadd.f32 %v1588_v17, %v416_v18 }
  0xf2   :  { %v688_v29 = vmax.f32 %v422_v21, 0.0  ;;  %v1644_v33 = vpop.f32.mrb[10].mxu1 }
  0xf3   :  { %v687_v25 = vmax.f32 %v417_v22, 0.0  ;;  %v749_v26 = vadd.f32 %v748_v20, %v686_v19  ;;  %v1100_v27 = vpop.f32.mrb[14].mxu0  ;;  %v1646_v34 = vpop.f32.mrb[11].mxu1 }
  0xf4   :  { %v426_v28 = vpop.f32.mrb[15].mxu0  ;;  %v432_v31 = vadd.f32 %v1100_v27, %v1588_v17 }
  0xf5   :  { %v750_v30 = vadd.f32 %v749_v26, %v687_v25  ;;  %v427_v32 = vadd.f32 %v1588_v17, %v426_v28 }
  0xf6   :  { %v690_v39 = vmax.f32 %v432_v31, 0.0  ;;  %v1650_v45 = vpop.f32.mrb[12].mxu1 }
  0xf7   :  { %v689_v35 = vmax.f32 %v427_v32, 0.0  ;;  %v751_v36 = vadd.f32 %v750_v30, %v688_v29  ;;  %v1103_v37 = vpop.f32.mrb[16].mxu0  ;;  %v1652_v46 = vpop.f32.mrb[13].mxu1 }
  0xf8   :  { %v436_v38 = vpop.f32.mrb[17].mxu0  ;;  %v442_v41 = vadd.f32 %v1103_v37, %v1588_v17 }
  0xf9   :  { %v752_v40 = vadd.f32 %v751_v36, %v689_v35  ;;  %v437_v44 = vadd.f32 %v1588_v17, %v436_v38 }
  0xfa   :  { %v692_v51 = vmax.f32 %v442_v41, 0.0  ;;  %v1656_v56 = vpop.f32.mrb[14].mxu1 }
  0xfb   :  { %v691_v47 = vmax.f32 %v437_v44, 0.0  ;;  %v753_v48 = vadd.f32 %v752_v40, %v690_v39  ;;  %v1106_v49 = vpop.f32.mrb[18].mxu0  ;;  %v1658_v58 = vpop.f32.mrb[15].mxu1 }
  0xfc   :  { %v446_v50 = vpop.f32.mrb[19].mxu0  ;;  %v452_v53 = vadd.f32 %v1106_v49, %v1588_v17 }
  0xfd   :  { %v754_v52 = vadd.f32 %v753_v48, %v691_v47  ;;  %v447_v54 = vadd.f32 %v1588_v17, %v446_v50 }
  0xfe   :  { %v694_v63 = vmax.f32 %v452_v53, 0.0  ;;  %v1662_v5 = vpop.f32.mrb[16].mxu1 }
  0xff   :  { %v693_v59 = vmax.f32 %v447_v54, 0.0  ;;  %v755_v60 = vadd.f32 %v754_v52, %v692_v51  ;;  %v1109_v61 = vpop.f32.mrb[20].mxu0  ;;  %v1664_v6 = vpop.f32.mrb[17].mxu1 }
 0x100   :  { %v456_v62 = vpop.f32.mrb[21].mxu0  ;;  %v462_v1 = vadd.f32 %v1109_v61, %v1588_v17 }
 0x101   :  { %v756_v0 = vadd.f32 %v755_v60, %v693_v59  ;;  %v457_v4 = vadd.f32 %v1588_v17, %v456_v62 }
 0x102   :  { %v696_v11 = vmax.f32 %v462_v1, 0.0  ;;  %v1668_v18 = vpop.f32.mrb[18].mxu1 }
 0x103   :  { %v695_v7 = vmax.f32 %v457_v4, 0.0  ;;  %v757_v8 = vadd.f32 %v756_v0, %v694_v63  ;;  %v1112_v9 = vpop.f32.mrb[22].mxu0  ;;  %v1670_v19 = vpop.f32.mrb[19].mxu1 }
 0x104   :  { %v466_v10 = vpop.f32.mrb[23].mxu0  ;;  %v472_v15 = vadd.f32 %v1112_v9, %v1588_v17 }
 0x105   :  { %v758_v14 = vadd.f32 %v757_v8, %v695_v7  ;;  %v467_v16 = vadd.f32 %v1588_v17, %v466_v10 }
 0x106   :  { %v698_v26 = vmax.f32 %v472_v15, 0.0  ;;  %v1674_v30 = vpop.f32.mrb[20].mxu1 }
 0x107   :  { %v697_v20 = vmax.f32 %v467_v16, 0.0  ;;  %v759_v21 = vadd.f32 %v758_v14, %v696_v11  ;;  %v1115_v22 = vpop.f32.mrb[24].mxu0  ;;  %v1676_v31 = vpop.f32.mrb[21].mxu1 }
 0x108   :  { %v476_v25 = vpop.f32.mrb[25].mxu0  ;;  %v482_v28 = vadd.f32 %v1115_v22, %v1588_v17 }
 0x109   :  { %v760_v27 = vadd.f32 %v759_v21, %v697_v20  ;;  %v477_v29 = vadd.f32 %v1588_v17, %v476_v25  ;;  %v527_v20 = vadd.f32 %v1588_v17, %v1610_v43  ;;  %v537_v43 = vadd.f32 %v1588_v17, %v1622_v57 }
 0x10a   :  { %v700_v38 = vmax.f32 %v482_v28, 0.0  ;;  %v1680_v44 = vpop.f32.mrb[22].mxu1  ;;  %v557_v57 = vadd.f32 %v1588_v17, %v1634_v13  ;;  %v577_v13 = vadd.f32 %v1588_v17, %v1646_v34  ;;  %v597_v34 = vadd.f32 %v1588_v17, %v1658_v58 }
 0x10b   :  { %v699_v32 = vmax.f32 %v477_v29, 0.0  ;;  %v761_v35 = vadd.f32 %v760_v27, %v698_v26  ;;  %v1118_v36 = vpop.f32.mrb[26].mxu0  ;;  %v1682_v47 = vpop.f32.mrb[23].mxu1  ;;  %v617_v58 = vadd.f32 %v1588_v17, %v1670_v19 }
 0x10c   :  { %v486_v37 = vpop.f32.mrb[27].mxu0  ;;  %v492_v40 = vadd.f32 %v1118_v36, %v1588_v17  ;;  %v637_v19 = vadd.f32 %v1588_v17, %v1682_v47 }
 0x10d   :  { %v762_v39 = vadd.f32 %v761_v35, %v699_v32  ;;  %v487_v41 = vadd.f32 %v1588_v17, %v486_v37  ;;  %v532_v32 = vadd.f32 %v1608_v42, %v1588_v17 }
 0x10e   :  { %v702_v52 = vmax.f32 %v492_v40, 0.0  ;;  %v1686_v60 = vpop.f32.mrb[24].mxu1 }
 0x10f   :  { %v701_v48 = vmax.f32 %v487_v41, 0.0  ;;  %v763_v49 = vadd.f32 %v762_v39, %v700_v38  ;;  %v1121_v50 = vpop.f32.mrb[28].mxu0  ;;  %v1688_v61 = vpop.f32.mrb[25].mxu1  ;;  %v709_v38 = vmax.f32 %v527_v20, 0.0  ;;  %v710_v40 = vmax.f32 %v532_v32, 0.0 }
 0x110   :  { %v496_v51 = vpop.f32.mrb[29].mxu0  ;;  %v502_v54 = vadd.f32 %v1121_v50, %v1588_v17  ;;  %v547_v50 = vadd.f32 %v1588_v17, %v1628_v3  ;;  %v567_v3 = vadd.f32 %v1588_v17, %v1640_v24  ;;  %v587_v24 = vadd.f32 %v1588_v17, %v1652_v46 }
 0x111   :  { %v764_v53 = vadd.f32 %v763_v49, %v701_v48  ;;  %v497_v59 = vadd.f32 %v1588_v17, %v496_v51  ;;  %v542_v48 = vadd.f32 %v1620_v55, %v1588_v17  ;;  %v711_v49 = vmax.f32 %v537_v43, 0.0 }
 0x112   :  { %v704_v4 = vmax.f32 %v502_v54, 0.0  ;;  %v1692_v10 = vpop.f32.mrb[26].mxu1  ;;  %v552_v51 = vadd.f32 %v1626_v2, %v1588_v17  ;;  %v713_v54 = vmax.f32 %v547_v50, 0.0  ;;  %v562_v55 = vadd.f32 %v1632_v12, %v1588_v17 }
 0x113   :  { %v703_v62 = vmax.f32 %v497_v59, 0.0  ;;  %v765_v63 = vadd.f32 %v764_v53, %v702_v52  ;;  %v1124_v0 = vpop.f32.mrb[30].mxu0  ;;  %v1694_v11 = vpop.f32.mrb[27].mxu1  ;;  %v712_v52 = vmax.f32 %v542_v48, 0.0  ;;  %v572_v2 = vadd.f32 %v1638_v23, %v1588_v17 }
 0x114   :  { %v506_v1 = vpop.f32.mrb[31].mxu0  ;;  %v512_v8 = vadd.f32 %v1124_v0, %v1588_v17  ;;  %v715_v0 = vmax.f32 %v557_v57, 0.0  ;;  %v582_v12 = vadd.f32 %v1644_v33, %v1588_v17  ;;  %v592_v23 = vadd.f32 %v1650_v45, %v1588_v17 }
 0x115   :  { %v766_v7 = vadd.f32 %v765_v63, %v703_v62  ;;  %v507_v9 = vadd.f32 %v1588_v17, %v506_v1  ;;  %v714_v62 = vmax.f32 %v552_v51, 0.0  ;;  %v602_v33 = vadd.f32 %v1656_v56, %v1588_v17 }
 0x116   :  { %v706_v25 = vmax.f32 %v512_v8, 0.0  ;;  %v1700_v28 = vpop.f32.mrb[28].mxu1  ;;  %v717_v8 = vmax.f32 %v567_v3, 0.0  ;;  %v723_v32 = vmax.f32 %v597_v34, 0.0  ;;  %v607_v46 = vadd.f32 %v1588_v17, %v1664_v6 }
 0x117   :  { %v705_v14 = vmax.f32 %v507_v9, 0.0  ;;  %v767_v15 = vadd.f32 %v766_v7, %v704_v4  ;;  %v1127_v16 = vpop.f32.mrb[32].mxu0  ;;  %v1704_v35 = vpop.f32.mrb[29].mxu1  ;;  %v716_v4 = vmax.f32 %v562_v55, 0.0  ;;  %v612_v45 = vadd.f32 %v1662_v5, %v1588_v17 }
 0x118   :  { %v522_v21 = vadd.f32 %v1127_v16, %v1588_v17  ;;  %v516_v22 = vpop.f32.mrb[33].mxu0  ;;  %v719_v16 = vmax.f32 %v577_v13, 0.0  ;;  %v622_v56 = vadd.f32 %v1668_v18, %v1588_v17  ;;  %v627_v6 = vadd.f32 %v1588_v17, %v1676_v31 }
 0x119   :  { %v768_v26 = vadd.f32 %v767_v15, %v705_v14  ;;  %v517_v27 = vadd.f32 %v1588_v17, %v516_v22  ;;  %v718_v14 = vmax.f32 %v572_v2, 0.0  ;;  %v632_v5 = vadd.f32 %v1674_v30, %v1588_v17 }
 0x11a   :  { %v708_v29 = vmax.f32 %v522_v21, 0.0  ;;  %v720_v21 = vmax.f32 %v582_v12, 0.0  ;;  %v642_v18 = vadd.f32 %v1680_v44, %v1588_v17  ;;  %v647_v31 = vadd.f32 %v1588_v17, %v1688_v61 }
 0x11b   :  { %v1706_v36 = vadd.f32 %v768_v26, %v706_v25  ;;  %v707_v37 = vmax.f32 %v517_v27, 0.0  ;;  %v721_v25 = vmax.f32 %v587_v24, 0.0  ;;  %v722_v27 = vmax.f32 %v592_v23, 0.0 }
 0x11c   :  { %v652_v30 = vadd.f32 %v1686_v60, %v1588_v17  ;;  %v657_v47 = vadd.f32 %v1588_v17, %v1694_v11  ;;  %v662_v44 = vadd.f32 %v1692_v10, %v1588_v17  ;;  %v667_v61 = vadd.f32 %v1588_v17, %v1704_v35 }
 0x11d   :  { %v776_v39 = vadd.f32 %v708_v29, %v707_v37 }
 0x11e   :  { %v736_v60 = vmax.f32 %v662_v44, 0.0 }
 0x11f   :  { %v777_v41 = vadd.f32 %v776_v39, %v709_v38  ;;  %v724_v38 = vmax.f32 %v602_v33, 0.0  ;;  %v725_v39 = vmax.f32 %v607_v46, 0.0 }
 0x121   :  { %v778_v42 = vadd.f32 %v777_v41, %v710_v40  ;;  %v726_v41 = vmax.f32 %v612_v45, 0.0 }
 0x123   :  { %v779_v53 = vadd.f32 %v778_v42, %v711_v49  ;;  %v727_v49 = vmax.f32 %v617_v58, 0.0  ;;  %v728_v42 = vmax.f32 %v622_v56, 0.0 }
 0x125   :  { %v780_v59 = vadd.f32 %v779_v53, %v712_v52  ;;  %v729_v52 = vmax.f32 %v627_v6, 0.0 }
 0x127   :  { %v781_v63 = vadd.f32 %v780_v59, %v713_v54  ;;  %v730_v54 = vmax.f32 %v632_v5, 0.0  ;;  %v731_v59 = vmax.f32 %v637_v19, 0.0 }
 0x129   :  { %v782_v1 = vadd.f32 %v781_v63, %v714_v62  ;;  %v732_v63 = vmax.f32 %v642_v18, 0.0 }
 0x12b   :  { %v783_v7 = vadd.f32 %v782_v1, %v715_v0  ;;  %v733_v0 = vmax.f32 %v647_v31, 0.0  ;;  %v734_v1 = vmax.f32 %v652_v30, 0.0 }
 0x12d   :  { %v784_v9 = vadd.f32 %v783_v7, %v716_v4  ;;  %v735_v4 = vmax.f32 %v657_v47, 0.0  ;;  %v770_v7 = vrot.slane %v1706_v36, 4 }
 0x12f   :  { %v785_v15 = vadd.f32 %v784_v9, %v717_v8  ;;  %v672_v9 = vadd.f32 %v1700_v28, %v1588_v17  ;;  %v771_v11 = vadd.f32 %v770_v7, %v1706_v36  ;;  %v992_v17 = vld [vmem:[%s1785_s4] ss:$0 sm:$0xff] }
 0x131   :  { %v786_v20 = vadd.f32 %v785_v15, %v718_v14  ;;  %v737_v14 = vmax.f32 %v667_v61, 0.0  ;;  %v738_v12 = vmax.f32 %v672_v9, 0.0  ;;  %v772_v24 = vrot.slane %v771_v11, 2 }
 0x133   :  { %v787_v22 = vadd.f32 %v786_v20, %v719_v16  ;;  %v773_v23 = vadd.f32 %v772_v24, %v771_v11 }
 0x135   :  { %v788_v26 = vadd.f32 %v787_v22, %v720_v21  ;;  %v774_v22 = vrot.slane %v773_v23, 1 }
 0x137   :  { %v789_v29 = vadd.f32 %v788_v26, %v721_v25  ;;  %v775_v26 = vadd.f32 %v774_v22, %v773_v23 }
 0x139   :  { %v790_v37 = vadd.f32 %v789_v29, %v722_v27 }
 0x13b   :  { %v791_v43 = vadd.f32 %v790_v37, %v723_v32 }
 0x13d   :  { %v792_v40 = vadd.f32 %v791_v43, %v724_v38 }
 0x13f   :  { %v793_v48 = vadd.f32 %v792_v40, %v725_v39 }
 0x141   :  { %v794_v50 = vadd.f32 %v793_v48, %v726_v41 }
 0x143   :  { %v795_v51 = vadd.f32 %v794_v50, %v727_v49 }
 0x145   :  { %v796_v53 = vadd.f32 %v795_v51, %v728_v42 }
 0x147   :  { %v797_v57 = vadd.f32 %v796_v53, %v729_v52 }
 0x149   :  { %v798_v62 = vadd.f32 %v797_v57, %v730_v54 }
 0x14b   :  { %v799_v55 = vadd.f32 %v798_v62, %v731_v59 }
 0x14d   :  { %v800_v3 = vadd.f32 %v799_v55, %v732_v63 }
 0x14f   :  { %v801_v2 = vadd.f32 %v800_v3, %v733_v0 }
 0x151   :  { %v802_v8 = vadd.f32 %v801_v2, %v734_v1 }
 0x153   :  { %v803_v13 = vadd.f32 %v802_v8, %v735_v4 }
 0x155   :  { %v804_v15 = vadd.f32 %v803_v13, %v736_v60 }
 0x157   :  { %v805_v16 = vadd.f32 %v804_v15, %v737_v14 }
 0x159   :  { %v806_v10 = vadd.f32 %v805_v16, %v738_v12 }
 0x15b   :  { %v807_v20 = vrot.slane %v806_v10, 4 }
 0x15d   :  { %v808_v21 = vadd.f32 %v807_v20, %v806_v10 }
 0x15f   :  { %v809_v35 = vrot.slane %v808_v21, 2 }
 0x161   :  { %v810_v25 = vadd.f32 %v809_v35, %v808_v21 }
 0x163   :  { %v811_v34 = vrot.slane %v810_v25, 1 }
 0x165   :  { %v812_v27 = vadd.f32 %v811_v34, %v810_v25 }
 0x167   :  { %v839_v29 = vsel %vm838_vm3, %v812_v27, %v775_v26 }
 0x168   :  { %1206 = vmatmul.mubr.f32.vlgmr.msra.gmra.mrb[30].mxu1 %v839_v29 }
 0x23b   :  { %v907_v28 = vpop.f32.mrb[30].mxu1 }
 0x23c   :  { %v908_v36 = vadd.f32 %v992_v17, %v907_v28  ;;  %v1207_v33 = vpop.f32.mrb[31].mxu1 }
 0x23e   :  { %911 = vst [vmem:[#allocation2] sm:$0x3] %v908_v36 }
 0x23f   :  { %1249 = shalt.err (!%p1246_p4)
}
 0x240   :  { %s1250_s28 = scalar_lea.hbm %s1786_s5, 32 }
 0x241   :  { %p1251_p5 = scmp.ne.s32.totalorder %s1786_s5, %s1250_s28  ;;  %p1254_p6 = scmp.lt.u32.totalorder %s1250_s28, %s1786_s5 }
 0x243   :  { %p1256_p7 = pnand %p1254_p6, %p1251_p5 }
 0x245   :  { %1259 = shalt.err (!%p1256_p7)
}
 0x246   :  { %921 = dma.vmem_to_hbm [thread:$0]  %s919_s25, 32, %s1786_s5, [#allocation3]  }
 0x247   :  { %1260 = dma.done.wait [#allocation3], 32  }
 0x248   :  { %1261 = vsyncadd [#allocation3], 4294967264 }
 0x249   :  { %925 = vsyncpa [#allocation3], 1 }

</bundles_post_ra>
